<compile_context>
chip_gen: v6e
topology: v6e:2x2x1
jax: 0.10.0
libtpu: 0.0.40
codegen_flags: <defaults>
</compile_context>

<pallas_src>
import functools

import jax
import jax.numpy as jnp
from jax.experimental import pallas as pl
from jax.experimental.pallas import tpu as pltpu


# ---------------------------------------------------------------------------
# Generic tiled matmul + bias (+ optional ReLU) kernel, bf16 in / f32 accumulate.
# ---------------------------------------------------------------------------

def _matmul_bias_kernel(x_ref, w_ref, b_ref, o_ref, acc_ref, *, relu):
    @pl.when(pl.program_id(2) == 0)
    def _():
        acc_ref[...] = jnp.zeros_like(acc_ref)

    acc_ref[...] += jnp.dot(x_ref[...], w_ref[...],
                            preferred_element_type=jnp.float32)

    @pl.when(pl.program_id(2) == pl.num_programs(2) - 1)
    def _():
        r = acc_ref[...] + b_ref[...]
        if relu:
            r = jnp.maximum(r, 0.0)
        o_ref[...] = r.astype(o_ref.dtype)


def _round_up(x, m):
    return (x + m - 1) // m * m


def _pick_tile(dim, pref):
    """Largest legal tile: prefer `pref`, fall back to the full dimension."""
    if dim <= pref or dim % pref != 0:
        return dim
    return pref


def _matmul_bias(x, w, b, *, out_dtype, relu):
    """x: (M, K) bf16, w: (K, N) bf16, b: (1, N) f32 -> (M, N) out_dtype."""
    M, K = x.shape
    K2, N = w.shape
    assert K == K2 and b.shape == (1, N)

    tm = _pick_tile(M, 256)
    tk = _pick_tile(K, 512)
    tn = _pick_tile(N, 512)

    return pl.pallas_call(
        functools.partial(_matmul_bias_kernel, relu=relu),
        out_shape=jax.ShapeDtypeStruct((M, N), out_dtype),
        grid_spec=pltpu.PrefetchScalarGridSpec(
            num_scalar_prefetch=0,
            grid=(M // tm, N // tn, K // tk),
            in_specs=[
                pl.BlockSpec((tm, tk), lambda i, j, k: (i, k)),
                pl.BlockSpec((tk, tn), lambda i, j, k: (k, j)),
                pl.BlockSpec((1, tn), lambda i, j, k: (0, j)),
            ],
            out_specs=pl.BlockSpec((tm, tn), lambda i, j, k: (i, j)),
            scratch_shapes=[pltpu.VMEM((tm, tn), jnp.float32)],
        ),
        compiler_params=pltpu.CompilerParams(
            dimension_semantics=("parallel", "parallel", "arbitrary"),
            vmem_limit_bytes=48 * 1024 * 1024),
    )(x, w, b)


# ---------------------------------------------------------------------------
# Recurrent LSTM kernel: only h @ w_hh + gates + state update stays sequential.
# gate_x (time-major, precomputed) is streamed in time chunks; h/c persist in VMEM.
# ---------------------------------------------------------------------------

def _lstm_chunk_kernel(gate_x_ref, whh_ref, bhh_ref, h_out_ref, h_scr, c_scr,
                       *, hidden_dim, t_chunk):
    @pl.when(pl.program_id(0) == 0)
    def _():
        h_scr[...] = jnp.zeros_like(h_scr)   # h_0 = 0
        c_scr[...] = jnp.zeros_like(c_scr)   # c_0 = 0

    H = hidden_dim

    def step(tt, carry):
        gates = (gate_x_ref[tt]                                          # (Bp, 4H) f32
                 + jnp.dot(h_scr[...].astype(jnp.bfloat16), whh_ref[...],
                           preferred_element_type=jnp.float32)
                 + bhh_ref[...])
        # torch.nn.LSTMCell gate order: i, f, g, o  (H is a multiple of 128 -> lane-aligned slices)
        i_g = jax.nn.sigmoid(gates[:, 0 * H:1 * H])
        f_g = jax.nn.sigmoid(gates[:, 1 * H:2 * H])
        g_g = jnp.tanh(gates[:, 2 * H:3 * H])
        o_g = jax.nn.sigmoid(gates[:, 3 * H:4 * H])

        c_new = f_g * c_scr[...] + i_g * g_g
        h_new = o_g * jnp.tanh(c_new)
        c_scr[...] = c_new
        h_scr[...] = h_new
        h_out_ref[tt] = h_new.astype(h_out_ref.dtype)
        return carry

    jax.lax.fori_loop(0, t_chunk, step, 0, unroll=True)


# ---------------------------------------------------------------------------
# Forward wrapper
# ---------------------------------------------------------------------------

def video_model_forward(x, params, *, hidden_dim, num_classes, t_chunk=4):
    """x: (B, T, F) float32 -> scores: (B, T, num_classes) float32."""
    B, T, F = x.shape
    H = hidden_dim
    F2 = params["w1"].shape[1]
    C = num_classes

    B_pad = _round_up(B, 8)              # sublane utilization
    T_pad = _round_up(T, t_chunk)
    C_pad = _round_up(C, 128)            # lane-dense classifier output

    # bf16 weights for the MXU; biases stay f32 (added to f32 accumulators).
    w1 = params["w1"].astype(jnp.bfloat16)
    w_ih = params["w_ih"].astype(jnp.bfloat16)
    w_hh = params["w_hh"].astype(jnp.bfloat16)
    w_cls = jnp.pad(params["w_cls"], ((0, 0), (0, C_pad - C))).astype(jnp.bfloat16)
    b_cls = jnp.pad(params["b_cls"], ((0, 0), (0, C_pad - C)))

    # Pad batch (zero rows are discarded at the end), fold (B, T) into rows.
    x_p = jnp.pad(x, ((0, B_pad - B), (0, 0), (0, 0)))
    x2d = x_p.reshape(B_pad * T, F).astype(jnp.bfloat16)

    # 1) lin = ReLU(x @ w1 + b1) over all rows at once.
    lin = _matmul_bias(x2d, w1, params["b1"], out_dtype=jnp.bfloat16, relu=True)
    # 2) gate_x = lin @ w_ih + b_ih over all rows at once.
    gate_x = _matmul_bias(lin, w_ih, params["b_ih"], out_dtype=jnp.float32, relu=False)

    # Time-major for the recurrence; pad time to a multiple of t_chunk (extra steps run
    # after the real ones and are sliced away, so they cannot affect real outputs).
    gate_x = gate_x.reshape(B_pad, T, 4 * H).transpose(1, 0, 2)      # (T, Bp, 4H)
    gate_x = jnp.pad(gate_x, ((0, T_pad - T), (0, 0), (0, 0)))

    # 3) Sequential recurrence, chunked over time.
    n_chunks = T_pad // t_chunk
    h_all = pl.pallas_call(
        functools.partial(_lstm_chunk_kernel, hidden_dim=H, t_chunk=t_chunk),
        out_shape=jax.ShapeDtypeStruct((T_pad, B_pad, H), jnp.bfloat16),
        grid_spec=pltpu.PrefetchScalarGridSpec(
            num_scalar_prefetch=0,
            grid=(n_chunks,),
            in_specs=[
                pl.BlockSpec((t_chunk, B_pad, 4 * H), lambda c: (c, 0, 0)),  # gate_x chunk
                pl.BlockSpec((H, 4 * H), lambda c: (0, 0)),                  # w_hh^T (bf16)
                pl.BlockSpec((1, 4 * H), lambda c: (0, 0)),                  # b_hh
            ],
            out_specs=pl.BlockSpec((t_chunk, B_pad, H), lambda c: (c, 0, 0)),
            scratch_shapes=[
                pltpu.VMEM((B_pad, H), jnp.float32),   # h_n (persists across chunks)
                pltpu.VMEM((B_pad, H), jnp.float32),   # c_n
            ],
        ),
        compiler_params=pltpu.CompilerParams(
            dimension_semantics=("arbitrary",),        # time chunks carry state -> sequential
            vmem_limit_bytes=48 * 1024 * 1024),
    )(gate_x, w_hh, params["b_hh"])

    # 4) Classifier over all timesteps at once, lane-dense (C padded to 128).
    scores2d = _matmul_bias(h_all.reshape(T_pad * B_pad, H), w_cls, b_cls,
                            out_dtype=jnp.float32, relu=False)
    scores = scores2d.reshape(T_pad, B_pad, C_pad).transpose(1, 0, 2)
    return scores[:B, :T, :C]


# ---------------------------------------------------------------------------
# References for correctness checking
# ---------------------------------------------------------------------------

def _reference(x, params, *, hidden_dim, use_bf16):
    """Pure-JAX reference of VideoModel.forward (optionally with matching bf16 policy)."""
    B, T, F = x.shape
    H = hidden_dim
    cast = (lambda a: a.astype(jnp.bfloat16)) if use_bf16 else (lambda a: a)
    w1, w_ih = cast(params["w1"]), cast(params["w_ih"])
    w_hh, w_cls = cast(params["w_hh"]), cast(params["w_cls"])

    def step(carry, x_t):
        h, c = carry
        lin = jnp.maximum(
            jnp.dot(cast(x_t), w1, preferred_element_type=jnp.float32) + params["b1"], 0.0)
        lin = cast(lin)
        gates = (jnp.dot(lin, w_ih, preferred_element_type=jnp.float32) + params["b_ih"]
                 + jnp.dot(cast(h), w_hh, preferred_element_type=jnp.float32) + params["b_hh"])
        i_g = jax.nn.sigmoid(gates[:, 0 * H:1 * H])
        f_g = jax.nn.sigmoid(gates[:, 1 * H:2 * H])
        g_g = jnp.tanh(gates[:, 2 * H:3 * H])
        o_g = jax.nn.sigmoid(gates[:, 3 * H:4 * H])
        c_new = f_g * c + i_g * g_g
        h_new = o_g * jnp.tanh(c_new)
        s = jnp.dot(cast(h_new), w_cls, preferred_element_type=jnp.float32) + params["b_cls"]
        return (h_new, c_new), s

    h0 = jnp.zeros((B, H), jnp.float32)
    c0 = jnp.zeros((B, H), jnp.float32)
    _, scores_t = jax.lax.scan(step, (h0, c0), jnp.transpose(x, (1, 0, 2)))
    return jnp.transpose(scores_t, (1, 0, 2))


def init_params(key, feat_dim, hidden_dim, num_classes):
    """Deterministic synthetic weights (shapes follow the PyTorch module, pre-transposed)."""
    F, F2, H, C = feat_dim, feat_dim // 2, hidden_dim, num_classes
    ks = jax.random.split(key, 8)
    s = 0.05
    return {
        "w1":    s * jax.random.normal(ks[0], (F, F2), jnp.float32),
        "b1":    s * jax.random.normal(ks[1], (1, F2), jnp.float32),
        "w_ih":  s * jax.random.normal(ks[2], (F2, 4 * H), jnp.float32),
        "w_hh":  s * jax.random.normal(ks[3], (H, 4 * H), jnp.float32),
        "b_ih":  s * jax.random.normal(ks[4], (1, 4 * H), jnp.float32),
        "b_hh":  s * jax.random.normal(ks[5], (1, 4 * H), jnp.float32),
        "w_cls": s * jax.random.normal(ks[6], (H, C), jnp.float32),
        "b_cls": s * jax.random.normal(ks[7], (1, C), jnp.float32),
    }


if __name__ == "__main__":
    # Small shapes consistent with the module (FEAT_VECT_DIM=4096, H=512 in the real model).
    B, T = 4, 8
    FEAT_DIM = 512        # stand-in for FEAT_VECT_DIM=4096 (scaled down for the demo)
    HIDDEN = 128          # real module default is 512 (also a multiple of 128)
    NUM_CLASSES = 22

    key = jax.random.PRNGKey(0)
    k_x, k_p = jax.random.split(key)
    x = jax.random.normal(k_x, (B, T, FEAT_DIM), jnp.float32)
    params = init_params(k_p, FEAT_DIM, HIDDEN, NUM_CLASSES)

    scores = video_model_forward(x, params, hidden_dim=HIDDEN, num_classes=NUM_CLASSES,
                                 t_chunk=4)
    scores = jax.block_until_ready(scores)
    assert scores.shape == (B, T, NUM_CLASSES)

    # Tight check against a reference with the same bf16-weight / f32-accumulate policy.
    ref_bf16 = _reference(x, params, hidden_dim=HIDDEN, use_bf16=True)
    assert jnp.allclose(scores, ref_bf16, atol=2e-3, rtol=2e-3), "mismatch vs bf16-matched reference"

    # Loose check against the pure-f32 semantics of the original module.
    ref_f32 = _reference(x, params, hidden_dim=HIDDEN, use_bf16=False)
    assert jnp.allclose(scores, ref_f32, atol=5e-2, rtol=5e-2), "mismatch vs f32 reference"

    print("KERNEL_OK")
</pallas_src>

<mosaic_0001>
module attributes {stable_mosaic.version = 11 : i64} {
  func.func @_matmul_bias_kernel(%arg0: i32, %arg1: i32, %arg2: i32, %arg3: memref<64x512xbf16, #tpu.memory_space<vmem>>, %arg4: memref<512x256xbf16, #tpu.memory_space<vmem>>, %arg5: memref<1x256xf32, #tpu.memory_space<vmem>>, %arg6: memref<64x256xbf16, #tpu.memory_space<vmem>>, %arg7: memref<64x256xf32, #tpu.memory_space<vmem>>) attributes {dimension_semantics = [#tpu.dimension_semantics<parallel>, #tpu.dimension_semantics<parallel>, #tpu.dimension_semantics<arbitrary>], iteration_bounds = array<i64: 1, 1, 1>, scalar_prefetch = 0 : i64, scratch_operands = 1 : i64, tpu.core_type = #tpu.core_type<tc>, window_params = [{transform_indices = @transform_0, window_bounds = array<i64: 64, 512>}, {transform_indices = @transform_1, window_bounds = array<i64: 512, 256>}, {transform_indices = @transform_2, window_bounds = array<i64: 1, 256>}, {transform_indices = @transform_3, window_bounds = array<i64: 64, 256>}]} {
    %c0_i32 = arith.constant 0 : i32
    %0 = arith.cmpi eq, %arg2, %c0_i32 : i32
    %1 = arith.extui %0 : i1 to i32
    %c0_i32_0 = arith.constant 0 : i32
    %2 = arith.cmpi ne, %1, %c0_i32_0 : i32
    scf.if %2 {
      %cst_10 = arith.constant 0.000000e+00 : f32
      %12 = vector.broadcast %cst_10 : f32 to vector<64x256xf32>
      %c0_11 = arith.constant 0 : index
      %c0_12 = arith.constant 0 : index
      %13 = vector.load %arg7[%c0_11, %c0_12] : memref<64x256xf32, #tpu.memory_space<vmem>>, vector<64x256xf32>
      tpu.vector_store %arg7[%c0_11, %c0_12], %12 {strides = array<i32>} : memref<64x256xf32, #tpu.memory_space<vmem>>, vector<64x256xf32>,
    } else {
    }
    %c0 = arith.constant 0 : index
    %c0_1 = arith.constant 0 : index
    %3 = vector.load %arg7[%c0, %c0_1] : memref<64x256xf32, #tpu.memory_space<vmem>>, vector<64x256xf32>
    %c0_2 = arith.constant 0 : index
    %c0_3 = arith.constant 0 : index
    %4 = vector.load %arg3[%c0_2, %c0_3] : memref<64x512xbf16, #tpu.memory_space<vmem>>, vector<64x512xbf16>
    %c0_4 = arith.constant 0 : index
    %c0_5 = arith.constant 0 : index
    %5 = vector.load %arg4[%c0_4, %c0_5] : memref<512x256xbf16, #tpu.memory_space<vmem>>, vector<512x256xbf16>
    %cst = arith.constant dense<0.000000e+00> : vector<64x256xf32>
    %6 = tpu.matmul %4, %5, %cst {dimension_numbers = #tpu.dot_dimension_numbers<[1], [0], [0], [1], [0, 0, 1, 1], [], []>} : vector<64x512xbf16>, vector<512x256xbf16>, vector<64x256xf32> -> vector<64x256xf32>
    %7 = arith.addf %3, %6 : vector<64x256xf32>
    %c0_6 = arith.constant 0 : index
    %c0_7 = arith.constant 0 : index
    %8 = vector.load %arg7[%c0_6, %c0_7] : memref<64x256xf32, #tpu.memory_space<vmem>>, vector<64x256xf32>
    tpu.vector_store %arg7[%c0_6, %c0_7], %7 {strides = array<i32>} : memref<64x256xf32, #tpu.memory_space<vmem>>, vector<64x256xf32>,
    %c0_i32_8 = arith.constant 0 : i32
    %9 = arith.cmpi eq, %arg2, %c0_i32_8 : i32
    %10 = arith.extui %9 : i1 to i32
    %c0_i32_9 = arith.constant 0 : i32
    %11 = arith.cmpi ne, %10, %c0_i32_9 : i32
    scf.if %11 {
      %c0_10 = arith.constant 0 : index
      %c0_11 = arith.constant 0 : index
      %12 = vector.load %arg7[%c0_10, %c0_11] : memref<64x256xf32, #tpu.memory_space<vmem>>, vector<64x256xf32>
      %c0_12 = arith.constant 0 : index
      %c0_13 = arith.constant 0 : index
      %13 = vector.load %arg5[%c0_12, %c0_13] : memref<1x256xf32, #tpu.memory_space<vmem>>, vector<1x256xf32>
      %14 = vector.broadcast %13 : vector<1x256xf32> to vector<64x256xf32>
      %15 = arith.addf %12, %14 : vector<64x256xf32>
      %cst_14 = arith.constant 0.000000e+00 : f32
      %16 = vector.broadcast %cst_14 : f32 to vector<64x256xf32>
      %17 = arith.maximumf %15, %16 : vector<64x256xf32>
      %18 = arith.truncf %17 : vector<64x256xf32> to vector<64x256xbf16>
      %c0_15 = arith.constant 0 : index
      %c0_16 = arith.constant 0 : index
      %19 = vector.load %arg6[%c0_15, %c0_16] : memref<64x256xbf16, #tpu.memory_space<vmem>>, vector<64x256xbf16>
      tpu.vector_store %arg6[%c0_15, %c0_16], %18 {strides = array<i32>} : memref<64x256xbf16, #tpu.memory_space<vmem>>, vector<64x256xbf16>,
    } else {
    }
    return
  }
  func.func @transform_0(%arg0: i32, %arg1: i32, %arg2: i32) -> (i32, i32) {
    %c0_i32 = arith.constant 0 : i32
    return %arg0, %arg2 : i32, i32
  }
  func.func @transform_1(%arg0: i32, %arg1: i32, %arg2: i32) -> (i32, i32) {
    %c0_i32 = arith.constant 0 : i32
    return %arg2, %arg1 : i32, i32
  }
  func.func @transform_2(%arg0: i32, %arg1: i32, %arg2: i32) -> (i32, i32) {
    %c0_i32 = arith.constant 0 : i32
    %c0_i32_0 = arith.constant 0 : i32
    return %c0_i32, %arg1 : i32, i32
  }
  func.func @transform_3(%arg0: i32, %arg1: i32, %arg2: i32) -> (i32, i32) {
    %c0_i32 = arith.constant 0 : i32
    return %arg0, %arg1 : i32, i32
  }
}

</mosaic_0001>

<bundles_post_ra>
// kernel: tpu_custom_call.1
= control target key start
LH: loop header
LB: loop body
LE: loop exit
PB: predicated region body
PF: predicated region fallthrough
CT: control target
= control target key end

     0   :  { %8 = vsyncpa [#allocation4], 0  ;;  %s1228_s0 = inlined_call_operand.hbm [shape: bf16[64,512], index: 0, kind: input, shape index: {}]   ;;  %s1229_s1 = inlined_call_operand.hbm [shape: bf16[512,256], index: 1, kind: input, shape index: {}]   ;;  %s1230_s2 = inlined_call_operand.vmem [shape: f32[1,256], index: 2, kind: input, shape index: {}]   ;;  %s1231_s3 = inlined_call_operand.hbm [shape: bf16[64,256], index: 3, kind: output, shape index: {}]  }
   0x1   :  { %9 = vsyncpa [#allocation7], 0 }
   0x2   :  { %10 = vsyncpa [#allocation5], 0  ;;  %s1163_s12 = smov [#allocation3]  }
   0x3   :  { %s16_s13 = sshll.u32 %s1163_s12, 4  ;;  %s17_s13 = int_to_ptr.vmem [resolvable:$true] %s16_s13 }
   0x4   :  { %s1105_s14 = scalar_lea.vmem %s17_s13, 2048  ;;  %p1110_p1 = scmp.lt.s32.totalorder %s17_s13, %s17_s13 }
   0x5   :  { %p1106_p0 = scmp.ne.s32.totalorder %s17_s13, %s1105_s14  ;;  %p1111_p2 = scmp.lt.s32.totalorder %s1105_s14, %s1105_s14 }
   0x7   :  { %p1112_p3 = por %p1111_p2, %p1110_p1 }
   0x9   :  { %p1113_p4 = pnand %p1112_p3, %p1106_p0 }
   0xb   :  { %1116 = shalt.err (!%p1113_p4)
}
   0xc   :  { %s1164_s15 = smov 256   ;;  %s1165_s16 = smov 16  }
   0xd   :  { %22 = dma.hbm_to_vmem [thread:$0]  %s1228_s0, 2048, %s17_s13, [#allocation4], %s1164_s15, %s1164_s15, %s1165_s16  }
   0xe   :  { %s1166_s19 = smov [#allocation6]  }
   0xf   :  { %s28_s20 = sshll.u32 %s1166_s19, 4  ;;  %s29_s20 = int_to_ptr.vmem [resolvable:$true] %s28_s20 }
  0x10   :  { %s1125_s21 = scalar_lea.vmem %s29_s20, 8192  ;;  %p1130_p6 = scmp.lt.s32.totalorder %s29_s20, %s29_s20 }
  0x11   :  { %p1126_p5 = scmp.ne.s32.totalorder %s29_s20, %s1125_s21  ;;  %p1131_p7 = scmp.lt.s32.totalorder %s1125_s21, %s1125_s21 }
  0x13   :  { %p1132_p8 = por %p1131_p7, %p1130_p6 }
  0x15   :  { %p1133_p9 = pnand %p1132_p8, %p1126_p5 }
  0x17   :  { %1136 = shalt.err (!%p1133_p9)
}
  0x18   :  { %s1167_s22 = smov 128   ;;  %s1168_s23 = smov 8  }
  0x19   :  { %34 = dma.hbm_to_vmem [thread:$0]  %s1229_s1, 8192, %s29_s20, [#allocation7], %s1167_s22, %s1167_s22, %s1168_s23  }
  0x1a   :  { %1157 = dma.done.wait [#allocation4], 2048  }
  0x1b   :  { %1158 = vsyncadd [#allocation4], 4294965248 }
  0x1c   :  { %1159 = dma.done.wait [#allocation7], 8192  }
  0x1d   :  { %1160 = vsyncadd [#allocation7], 4294959104  ;;  %v977_v0 = vld [vmem:[#allocation6 + $0x74] ss:$8 sps:$4 sm:$0xff]   ;;  %v981_v2 = vld [vmem:[#allocation6 + $0x70] ss:$8 sps:$4 sm:$0xff]  }
  0x1e   :  { %v979_v1 = vld [vmem:[#allocation6 + $0x174] ss:$8 sps:$4 sm:$0xff]   ;;  %559 = vmatprep.subr.bf16.mxu0 %v977_v0  ;;  %v982_v3 = vld [vmem:[#allocation6 + $0x170] ss:$8 sps:$4 sm:$0xff]   ;;  %v983_v4 = vld [vmem:[#allocation6 + $0x64] ss:$8 sps:$4 sm:$0xff]  }
  0x1f   :  { %632 = vmatprep.subr.bf16.mxu1 %v979_v1  ;;  %560 = vmatpush1.bf16.msra.mxu0 %v981_v2  ;;  %v985_v5 = vld [vmem:[#allocation6 + $0x164] ss:$8 sps:$4 sm:$0xff]   ;;  %v987_v6 = vld [vmem:[#allocation6 + $0x60] ss:$8 sps:$4 sm:$0xff]   ;;  %v989_v8 = vld [vmem:[#allocation6 + $0x54] ss:$8 sps:$4 sm:$0xff]  }
  0x20   :  { %633 = vmatpush1.bf16.msra.mxu1 %v982_v3  ;;  %561 = vmatprep.subr.bf16.mxu0 %v983_v4  ;;  %v988_v7 = vld [vmem:[#allocation6 + $0x160] ss:$8 sps:$4 sm:$0xff]   ;;  %v991_v9 = vld [vmem:[#allocation6 + $0x154] ss:$8 sps:$4 sm:$0xff]   ;;  %v993_v10 = vld [vmem:[#allocation6 + $0x50] ss:$8 sps:$4 sm:$0xff]  }
  0x21   :  { %634 = vmatprep.subr.bf16.mxu1 %v985_v5  ;;  %v994_v11 = vld [vmem:[#allocation6 + $0x150] ss:$8 sps:$4 sm:$0xff]   ;;  %v995_v12 = vld [vmem:[#allocation6 + $0x44] ss:$8 sps:$4 sm:$0xff]   ;;  %v999_v14 = vld [vmem:[#allocation6 + $0x40] ss:$8 sps:$4 sm:$0xff]  }
  0x22   :  { %v997_v13 = vld [vmem:[#allocation6 + $0x144] ss:$8 sps:$4 sm:$0xff]   ;;  %v1000_v15 = vld [vmem:[#allocation6 + $0x140] ss:$8 sps:$4 sm:$0xff]   ;;  %v1001_v16 = vld [vmem:[#allocation6 + $0x34] ss:$8 sps:$4 sm:$0xff]  }
  0x23   :  { %562 = vmatpush1.bf16.msra.mxu0 %v987_v6  ;;  %v1003_v17 = vld [vmem:[#allocation6 + $0x134] ss:$8 sps:$4 sm:$0xff]   ;;  %v1005_v18 = vld [vmem:[#allocation6 + $0x30] ss:$8 sps:$4 sm:$0xff]   ;;  %v1007_v20 = vld [vmem:[#allocation6 + $0x24] ss:$8 sps:$4 sm:$0xff]  }
  0x24   :  { %635 = vmatpush1.bf16.msra.mxu1 %v988_v7  ;;  %563 = vmatprep.subr.bf16.mxu0 %v989_v8  ;;  %v1006_v19 = vld [vmem:[#allocation6 + $0x130] ss:$8 sps:$4 sm:$0xff]   ;;  %v1009_v21 = vld [vmem:[#allocation6 + $0x124] ss:$8 sps:$4 sm:$0xff]   ;;  %v1011_v22 = vld [vmem:[#allocation6 + $0x20] ss:$8 sps:$4 sm:$0xff]  }
  0x25   :  { %636 = vmatprep.subr.bf16.mxu1 %v991_v9  ;;  %v1012_v23 = vld [vmem:[#allocation6 + $0x120] ss:$8 sps:$4 sm:$0xff]   ;;  %v1013_v24 = vld [vmem:[#allocation6 + $0x14] ss:$8 sps:$4 sm:$0xff]   ;;  %v1017_v26 = vld [vmem:[#allocation6 + $0x10] ss:$8 sps:$4 sm:$0xff]  }
  0x26   :  { %v1015_v25 = vld [vmem:[#allocation6 + $0x114] ss:$8 sps:$4 sm:$0xff]   ;;  %v1018_v27 = vld [vmem:[#allocation6 + $0x110] ss:$8 sps:$4 sm:$0xff]   ;;  %v1019_v28 = vld [vmem:[#allocation6 + $0x4] ss:$8 sps:$4 sm:$0xff]  }
  0x27   :  { %564 = vmatpush1.bf16.msra.mxu0 %v993_v10  ;;  %v1021_v29 = vld [vmem:[#allocation6 + $0x104] ss:$8 sps:$4 sm:$0xff]   ;;  %v1023_v30 = vld [vmem:[#allocation6] ss:$8 sps:$4 sm:$0xff]   ;;  %v1025_v32 = vld [vmem:[#allocation6 + $0xf4] ss:$8 sps:$4 sm:$0xff]  }
  0x28   :  { %637 = vmatpush1.bf16.msra.mxu1 %v994_v11  ;;  %565 = vmatprep.subr.bf16.mxu0 %v995_v12  ;;  %v1024_v31 = vld [vmem:[#allocation6 + $0x100] ss:$8 sps:$4 sm:$0xff]   ;;  %v1027_v33 = vld [vmem:[#allocation6 + $0x1f4] ss:$8 sps:$4 sm:$0xff]   ;;  %v1029_v34 = vld [vmem:[#allocation6 + $0xf0] ss:$8 sps:$4 sm:$0xff]  }
  0x29   :  { %638 = vmatprep.subr.bf16.mxu1 %v997_v13  ;;  %v1030_v35 = vld [vmem:[#allocation6 + $0x1f0] ss:$8 sps:$4 sm:$0xff]   ;;  %v1031_v36 = vld [vmem:[#allocation6 + $0xe4] ss:$8 sps:$4 sm:$0xff]   ;;  %v1035_v38 = vld [vmem:[#allocation6 + $0xe0] ss:$8 sps:$4 sm:$0xff]  }
  0x2a   :  { %v1033_v37 = vld [vmem:[#allocation6 + $0x1e4] ss:$8 sps:$4 sm:$0xff]   ;;  %v1036_v39 = vld [vmem:[#allocation6 + $0x1e0] ss:$8 sps:$4 sm:$0xff]   ;;  %v1037_v40 = vld [vmem:[#allocation6 + $0xd4] ss:$8 sps:$4 sm:$0xff]  }
  0x2b   :  { %566 = vmatpush1.bf16.msra.mxu0 %v999_v14  ;;  %v1039_v41 = vld [vmem:[#allocation6 + $0x1d4] ss:$8 sps:$4 sm:$0xff]   ;;  %v1041_v42 = vld [vmem:[#allocation6 + $0xd0] ss:$8 sps:$4 sm:$0xff]   ;;  %v1043_v44 = vld [vmem:[#allocation6 + $0xc4] ss:$8 sps:$4 sm:$0xff]  }
  0x2c   :  { %639 = vmatpush1.bf16.msra.mxu1 %v1000_v15  ;;  %567 = vmatprep.subr.bf16.mxu0 %v1001_v16  ;;  %v1042_v43 = vld [vmem:[#allocation6 + $0x1d0] ss:$8 sps:$4 sm:$0xff]   ;;  %v1045_v45 = vld [vmem:[#allocation6 + $0x1c4] ss:$8 sps:$4 sm:$0xff]   ;;  %v1047_v46 = vld [vmem:[#allocation6 + $0xc0] ss:$8 sps:$4 sm:$0xff]   ;;  %v758_v16 = vlaneseq }
  0x2d   :  { %640 = vmatprep.subr.bf16.mxu1 %v1003_v17  ;;  %v1048_v47 = vld [vmem:[#allocation6 + $0x1c0] ss:$8 sps:$4 sm:$0xff]   ;;  %v1049_v48 = vld [vmem:[#allocation6 + $0xb4] ss:$8 sps:$4 sm:$0xff]   ;;  %v1053_v52 = vld [vmem:[#allocation6 + $0xb0] ss:$8 sps:$4 sm:$0xff]  }
  0x2e   :  { %v1075_v49 = vld [vmem:[#allocation3 + $0x4] ss:$16 sps:$4 sm:$0xff]   ;;  %v1078_v51 = vld [vmem:[#allocation3 + $0xc] ss:$16 sps:$4 sm:$0xff]   ;;  %v1054_v53 = vld [vmem:[#allocation6 + $0x1b0] ss:$8 sps:$4 sm:$0xff]  }
  0x2f   :  { %568 = vmatpush1.bf16.msra.mxu0 %v1005_v18  ;;  %v1051_v50 = vld [vmem:[#allocation6 + $0x1b4] ss:$8 sps:$4 sm:$0xff]   ;;  %591 = vmatprep.mubr.bf16.mxu0 %v1075_v49  ;;  %v1055_v54 = vld [vmem:[#allocation6 + $0xa4] ss:$8 sps:$4 sm:$0xff]   ;;  %v1059_v56 = vld [vmem:[#allocation6 + $0xa0] ss:$8 sps:$4 sm:$0xff]  }
  0x30   :  { %641 = vmatpush1.bf16.msra.mxu1 %v1006_v19  ;;  %569 = vmatprep.subr.bf16.mxu0 %v1007_v20  ;;  %v1057_v55 = vld [vmem:[#allocation6 + $0x1a4] ss:$8 sps:$4 sm:$0xff]   ;;  %v1060_v57 = vld [vmem:[#allocation6 + $0x1a0] ss:$8 sps:$4 sm:$0xff]   ;;  %v1061_v58 = vld [vmem:[#allocation6 + $0x94] ss:$8 sps:$4 sm:$0xff]  }
  0x31   :  { %642 = vmatprep.subr.bf16.mxu1 %v1009_v21  ;;  %664 = vmatprep.mubr.bf16.mxu1 %v1078_v51  ;;  %v1063_v59 = vld [vmem:[#allocation6 + $0x194] ss:$8 sps:$4 sm:$0xff]   ;;  %v1065_v60 = vld [vmem:[#allocation6 + $0x90] ss:$8 sps:$4 sm:$0xff]   ;;  %v1067_v62 = vld [vmem:[#allocation6 + $0x84] ss:$8 sps:$4 sm:$0xff]  }
  0x32   :  { %v1066_v61 = vld [vmem:[#allocation6 + $0x190] ss:$8 sps:$4 sm:$0xff]   ;;  %v1069_v63 = vld [vmem:[#allocation6 + $0x184] ss:$8 sps:$4 sm:$0xff]   ;;  %v1071_v0 = vld [vmem:[#allocation6 + $0x80] ss:$8 sps:$4 sm:$0xff]  }
  0x33   :  { %570 = vmatpush1.bf16.msra.mxu0 %v1011_v22  ;;  %v1072_v1 = vld [vmem:[#allocation6 + $0x180] ss:$8 sps:$4 sm:$0xff]   ;;  %v1079_v4 = vld [vmem:[#allocation3 + $0x24] ss:$16 sps:$4 sm:$0xff]   ;;  %v1081_v5 = vld [vmem:[#allocation3 + $0x2c] ss:$16 sps:$4 sm:$0xff]  }
  0x34   :  { %643 = vmatpush1.bf16.msra.mxu1 %v1012_v23  ;;  %571 = vmatprep.subr.bf16.mxu0 %v1013_v24  ;;  %v1073_v2 = vld [vmem:[#allocation3] ss:$16 sps:$4 sm:$0xff]   ;;  %v1076_v3 = vld [vmem:[#allocation3 + $0x8] ss:$16 sps:$4 sm:$0xff]   ;;  %v1085_v8 = vld [vmem:[#allocation3 + $0x44] ss:$16 sps:$4 sm:$0xff]  }
  0x35   :  { %644 = vmatprep.subr.bf16.mxu1 %v1015_v25  ;;  %v1083_v6 = vld [vmem:[#allocation3 + $0x20] ss:$16 sps:$4 sm:$0xff]   ;;  %v1084_v7 = vld [vmem:[#allocation3 + $0x28] ss:$16 sps:$4 sm:$0xff]   ;;  %v1087_v9 = vld [vmem:[#allocation3 + $0x4c] ss:$16 sps:$4 sm:$0xff]  }
  0x36   :  { %v1089_v10 = vld [vmem:[#allocation3 + $0x40] ss:$16 sps:$4 sm:$0xff]   ;;  %v1090_v11 = vld [vmem:[#allocation3 + $0x48] ss:$16 sps:$4 sm:$0xff]   ;;  %v1091_v12 = vld [vmem:[#allocation3 + $0x64] ss:$16 sps:$4 sm:$0xff]  }
  0x37   :  { %572 = vmatpush1.bf16.msra.mxu0 %v1017_v26  ;;  %v1093_v13 = vld [vmem:[#allocation3 + $0x6c] ss:$16 sps:$4 sm:$0xff]   ;;  %v1095_v14 = vld [vmem:[#allocation3 + $0x60] ss:$16 sps:$4 sm:$0xff]   ;;  %v1096_v15 = vld [vmem:[#allocation3 + $0x68] ss:$16 sps:$4 sm:$0xff]  }
  0x38   :  { %645 = vmatpush1.bf16.msra.mxu1 %v1018_v27  ;;  %573 = vmatprep.subr.bf16.mxu0 %v1019_v28  ;;  %v759_v17 = vshrl.u32 %v758_v16, 7  ;;  %v756_v19 = vld [vmem:[%s1230_s2] sm:$0x3]  ;;  %s1169_s2 = smov [#allocation8]  }
  0x39   :  { %646 = vmatprep.subr.bf16.mxu1 %v1021_v29  ;;  %s861_s26 = sshll.u32 %s1169_s2, 4  ;;  %s862_s26 = int_to_ptr.vmem [resolvable:$true] %s861_s26 }
  0x3a   :  { %v760_v18 = vsub.s32 0, %v759_v17  ;;  %v764_v20 = vsub.s32 1, %v759_v17  ;;  %s1137_s27 = scalar_lea.vmem %s862_s26, 1024  ;;  %p1142_p11 = scmp.lt.s32.totalorder %s862_s26, %s862_s26 }
  0x3b   :  { %574 = vmatpush1.bf16.msra.mxu0 %v1023_v30  ;;  %p1138_p10 = scmp.ne.s32.totalorder %s862_s26, %s1137_s27  ;;  %p1143_p12 = scmp.lt.s32.totalorder %s1137_s27, %s1137_s27 }
  0x3c   :  { %647 = vmatpush1.bf16.msra.mxu1 %v1024_v31  ;;  %575 = vmatprep.subr.bf16.mxu0 %v1025_v32  ;;  %v1202_v21 = vrot.slane %v756_v19, %v760_v18  ;;  %v1204_v25 = vrot.slane %v756_v19, %v764_v20 }
  0x3d   :  { %648 = vmatprep.subr.bf16.mxu1 %v1027_v33  ;;  %p1144_p13 = por %p1143_p12, %p1142_p11 }
  0x3f   :  { %576 = vmatpush2.bf16.msra.mxu0 %v1029_v34  ;;  %p1145_p0 = pnand %p1144_p13, %p1138_p10 }
  0x40   :  { %649 = vmatpush2.bf16.msra.mxu1 %v1030_v35  ;;  %577 = vmatprep.subr.bf16.mxu0 %v1031_v36 }
  0x41   :  { %650 = vmatprep.subr.bf16.mxu1 %v1033_v37 }
  0x43   :  { %578 = vmatpush2.bf16.msra.mxu0 %v1035_v38 }
  0x44   :  { %651 = vmatpush2.bf16.msra.mxu1 %v1036_v39  ;;  %579 = vmatprep.subr.bf16.mxu0 %v1037_v40 }
  0x45   :  { %652 = vmatprep.subr.bf16.mxu1 %v1039_v41 }
  0x47   :  { %580 = vmatpush2.bf16.msra.mxu0 %v1041_v42 }
  0x48   :  { %653 = vmatpush2.bf16.msra.mxu1 %v1042_v43  ;;  %581 = vmatprep.subr.bf16.mxu0 %v1043_v44 }
  0x49   :  { %654 = vmatprep.subr.bf16.mxu1 %v1045_v45 }
  0x4b   :  { %582 = vmatpush2.bf16.msra.mxu0 %v1047_v46 }
  0x4c   :  { %655 = vmatpush2.bf16.msra.mxu1 %v1048_v47  ;;  %583 = vmatprep.subr.bf16.mxu0 %v1049_v48 }
  0x4d   :  { %656 = vmatprep.subr.bf16.mxu1 %v1051_v50 }
  0x4f   :  { %584 = vmatpush2.bf16.msra.mxu0 %v1053_v52 }
  0x50   :  { %657 = vmatpush2.bf16.msra.mxu1 %v1054_v53  ;;  %585 = vmatprep.subr.bf16.mxu0 %v1055_v54 }
  0x51   :  { %658 = vmatprep.subr.bf16.mxu1 %v1057_v55 }
  0x53   :  { %586 = vmatpush2.bf16.msra.mxu0 %v1059_v56 }
  0x54   :  { %659 = vmatpush2.bf16.msra.mxu1 %v1060_v57  ;;  %587 = vmatprep.subr.bf16.mxu0 %v1061_v58 }
  0x55   :  { %660 = vmatprep.subr.bf16.mxu1 %v1063_v59 }
  0x57   :  { %588 = vmatpush2.bf16.msra.mxu0 %v1065_v60 }
  0x58   :  { %661 = vmatpush2.bf16.msra.mxu1 %v1066_v61  ;;  %589 = vmatprep.subr.bf16.mxu0 %v1067_v62 }
  0x59   :  { %662 = vmatprep.subr.bf16.mxu1 %v1069_v63 }
  0x5b   :  { %590 = vmatpush2.bf16.msra.mxu0 %v1071_v0 }
  0x5c   :  { %663 = vmatpush2.bf16.msra.mxu1 %v1072_v1 }
  0x5e   :  { %592 = vmatmul.mubr.bf16.vlgmr.msra.gmra.mxu0 %v1073_v2 }
  0x5f   :  { %665 = vmatmul.mubr.bf16.vlgmr.msra.gmra.mxu1 %v1076_v3  ;;  %601 = vmatprep.mubr.bf16.mxu0 %v1079_v4 }
  0x60   :  { %674 = vmatprep.mubr.bf16.mxu1 %v1081_v5 }
  0x66   :  { %602 = vmatmul.mubr.bf16.gmra.mxu0 %v1083_v6 }
  0x67   :  { %675 = vmatmul.mubr.bf16.gmra.mxu1 %v1084_v7  ;;  %611 = vmatprep.mubr.bf16.mxu0 %v1085_v8 }
  0x68   :  { %684 = vmatprep.mubr.bf16.mxu1 %v1087_v9 }
  0x6e   :  { %612 = vmatmul.mubr.bf16.gmra.mxu0 %v1089_v10 }
  0x6f   :  { %685 = vmatmul.mubr.bf16.gmra.mxu1 %v1090_v11  ;;  %621 = vmatprep.mubr.bf16.mxu0 %v1091_v12 }
  0x70   :  { %694 = vmatprep.mubr.bf16.mxu1 %v1093_v13 }
  0x76   :  { %622 = vmatmul.mubr.bf16.gmra.mxu0 %v1095_v14 }
  0x77   :  { %695 = vmatmul.mubr.bf16.gmra.mxu1 %v1096_v15 }
 0x11e   :  { %v593_v22 = vpop.f32.mrf.mxu0 }
 0x11f   :  { %v666_v23 = vpop.f32.mrf.mxu1 }
 0x120   :  { %v667_v24 = vadd.f32 %v666_v23, %v593_v22  ;;  %v595_v26 = vpop.f32.mrf.mxu0 }
 0x121   :  { %v668_v27 = vpop.f32.mrf.mxu1 }
 0x122   :  { %v768_v28 = vadd.f32 %v1202_v21, %v667_v24  ;;  %v669_v29 = vadd.f32 %v668_v27, %v595_v26  ;;  %v597_v30 = vpop.f32.mrf.mxu0 }
 0x123   :  { %v670_v31 = vpop.f32.mrf.mxu1 }
 0x124   :  { %v769_v32 = vadd.f32 %v1204_v25, %v669_v29  ;;  %v671_v33 = vadd.f32 %v670_v31, %v597_v30  ;;  %v599_v34 = vpop.f32.mrf.mxu0  ;;  %v784_v36 = vmax.f32 %v768_v28, 0.0 }
 0x125   :  { %v672_v35 = vpop.f32.mrf.mxu1 }
 0x126   :  { %v785_v37 = vmax.f32 %v769_v32, 0.0  ;;  %v770_v38 = vadd.f32 %v1202_v21, %v671_v33  ;;  %v673_v39 = vadd.f32 %v672_v35, %v599_v34  ;;  %v603_v40 = vpop.f32.mrf.mxu0 }
 0x127   :  { %v676_v41 = vpop.f32.mrf.mxu1 }
 0x128   :  { %v962_v42 = vpack.c.bf16 %v785_v37, %v784_v36  ;;  %v771_v43 = vadd.f32 %v1204_v25, %v673_v39  ;;  %v677_v44 = vadd.f32 %v676_v41, %v603_v40  ;;  %v605_v45 = vpop.f32.mrf.mxu0  ;;  %v786_v47 = vmax.f32 %v770_v38, 0.0 }
 0x129   :  { %v678_v46 = vpop.f32.mrf.mxu1 }
 0x12a   :  { %848 = vst [vmem:[#allocation8] sm:$0xff] %v962_v42  ;;  %v787_v48 = vmax.f32 %v771_v43, 0.0  ;;  %v772_v49 = vadd.f32 %v1202_v21, %v677_v44  ;;  %v679_v50 = vadd.f32 %v678_v46, %v605_v45  ;;  %v607_v51 = vpop.f32.mrf.mxu0 }
 0x12b   :  { %v680_v52 = vpop.f32.mrf.mxu1 }
 0x12c   :  { %v963_v53 = vpack.c.bf16 %v787_v48, %v786_v47  ;;  %v773_v54 = vadd.f32 %v1204_v25, %v679_v50  ;;  %v681_v55 = vadd.f32 %v680_v52, %v607_v51  ;;  %v609_v56 = vpop.f32.mrf.mxu0  ;;  %v788_v58 = vmax.f32 %v772_v49, 0.0 }
 0x12d   :  { %v682_v57 = vpop.f32.mrf.mxu1 }
 0x12e   :  { %849 = vst [vmem:[#allocation8 + $0x8] sm:$0xff] %v963_v53  ;;  %v789_v59 = vmax.f32 %v773_v54, 0.0  ;;  %v774_v60 = vadd.f32 %v1202_v21, %v681_v55  ;;  %v683_v61 = vadd.f32 %v682_v57, %v609_v56  ;;  %v613_v62 = vpop.f32.mrf.mxu0 }
 0x12f   :  { %v686_v63 = vpop.f32.mrf.mxu1 }
 0x130   :  { %v964_v0 = vpack.c.bf16 %v789_v59, %v788_v58  ;;  %v775_v1 = vadd.f32 %v1204_v25, %v683_v61  ;;  %v687_v2 = vadd.f32 %v686_v63, %v613_v62  ;;  %v615_v3 = vpop.f32.mrf.mxu0  ;;  %v790_v5 = vmax.f32 %v774_v60, 0.0 }
 0x131   :  { %v688_v4 = vpop.f32.mrf.mxu1 }
 0x132   :  { %850 = vst [vmem:[#allocation8 + $0x10] sm:$0xff] %v964_v0  ;;  %v791_v6 = vmax.f32 %v775_v1, 0.0  ;;  %v776_v7 = vadd.f32 %v1202_v21, %v687_v2  ;;  %v689_v8 = vadd.f32 %v688_v4, %v615_v3  ;;  %v617_v9 = vpop.f32.mrf.mxu0 }
 0x133   :  { %v690_v10 = vpop.f32.mrf.mxu1 }
 0x134   :  { %v965_v11 = vpack.c.bf16 %v791_v6, %v790_v5  ;;  %v777_v12 = vadd.f32 %v1204_v25, %v689_v8  ;;  %v691_v13 = vadd.f32 %v690_v10, %v617_v9  ;;  %v619_v14 = vpop.f32.mrf.mxu0  ;;  %v792_v16 = vmax.f32 %v776_v7, 0.0 }
 0x135   :  { %v692_v15 = vpop.f32.mrf.mxu1 }
 0x136   :  { %851 = vst [vmem:[#allocation8 + $0x18] sm:$0xff] %v965_v11  ;;  %v793_v17 = vmax.f32 %v777_v12, 0.0  ;;  %v778_v18 = vadd.f32 %v1202_v21, %v691_v13  ;;  %v693_v19 = vadd.f32 %v692_v15, %v619_v14  ;;  %v623_v20 = vpop.f32.mrf.mxu0 }
 0x137   :  { %v696_v22 = vpop.f32.mrf.mxu1 }
 0x138   :  { %v966_v23 = vpack.c.bf16 %v793_v17, %v792_v16  ;;  %v779_v24 = vadd.f32 %v1204_v25, %v693_v19  ;;  %v697_v26 = vadd.f32 %v696_v22, %v623_v20  ;;  %v625_v27 = vpop.f32.mrf.mxu0  ;;  %v794_v29 = vmax.f32 %v778_v18, 0.0 }
 0x139   :  { %v698_v28 = vpop.f32.mrf.mxu1 }
 0x13a   :  { %852 = vst [vmem:[#allocation8 + $0x20] sm:$0xff] %v966_v23  ;;  %v795_v30 = vmax.f32 %v779_v24, 0.0  ;;  %v780_v31 = vadd.f32 %v1202_v21, %v697_v26  ;;  %v699_v32 = vadd.f32 %v698_v28, %v625_v27  ;;  %v627_v33 = vpop.f32.mrf.mxu0 }
 0x13b   :  { %v700_v34 = vpop.f32.mrf.mxu1 }
 0x13c   :  { %v967_v35 = vpack.c.bf16 %v795_v30, %v794_v29  ;;  %v781_v36 = vadd.f32 %v1204_v25, %v699_v32  ;;  %v701_v37 = vadd.f32 %v700_v34, %v627_v33  ;;  %v629_v38 = vpop.f32.mrf.mxu0  ;;  %v796_v40 = vmax.f32 %v780_v31, 0.0 }
 0x13d   :  { %v702_v39 = vpop.f32.mrf.mxu1 }
 0x13e   :  { %853 = vst [vmem:[#allocation8 + $0x28] sm:$0xff] %v967_v35  ;;  %v797_v41 = vmax.f32 %v781_v36, 0.0  ;;  %v782_v42 = vadd.f32 %v1202_v21, %v701_v37  ;;  %v703_v43 = vadd.f32 %v702_v39, %v629_v38 }
 0x140   :  { %v968_v44 = vpack.c.bf16 %v797_v41, %v796_v40  ;;  %v783_v45 = vadd.f32 %v1204_v25, %v703_v43  ;;  %v798_v46 = vmax.f32 %v782_v42, 0.0 }
 0x142   :  { %854 = vst [vmem:[#allocation8 + $0x30] sm:$0xff] %v968_v44  ;;  %v799_v47 = vmax.f32 %v783_v45, 0.0 }
 0x144   :  { %v969_v48 = vpack.c.bf16 %v799_v47, %v798_v46 }
 0x146   :  { %855 = vst [vmem:[#allocation8 + $0x38] sm:$0xff] %v969_v48 }
 0x147   :  { %1148 = shalt.err (!%p1145_p0)
}
 0x148   :  { %867 = dma.vmem_to_hbm [thread:$0]  %s862_s26, 1024, %s1231_s3, [#allocation5], %s1167_s22, %s1167_s22, %s1168_s23  }
 0x149   :  { %1161 = dma.done.wait [#allocation5], 1024  }
 0x14a   :  { %1162 = vsyncadd [#allocation5], 4294966272 }
 0x14b   :  { %871 = vsyncpa [#allocation4], 1 }
 0x14c   :  { %872 = vsyncpa [#allocation7], 1 }
 0x14d   :  { %873 = vsyncpa [#allocation5], 1 }

</bundles_post_ra>
